<compile_context>
chip_gen: v5e
topology: v5e:2x2
jax: 0.10.0
libtpu: 0.0.40
codegen_flags: <defaults>
</compile_context>

<pallas_src>
import functools
import math

import jax
import jax.numpy as jnp
from jax.experimental import pallas as pl
from jax.experimental.pallas import tpu as pltpu


def _round_up(x, m):
    return ((x + m - 1) // m) * m


# ------------------------------------------------------------------
# Sinusoidal 2D position embedding (deterministic, pure JAX "init" code)
# ------------------------------------------------------------------
def sinusoidal_pos_emb_2d(n_patches: int, emb_dim: int) -> jnp.ndarray:
    """Returns (n_patches, emb_dim) float32 position embedding."""
    # emb_dim must be a multiple of 4 (the original PyTorch module has the same
    # constraint: with an odd half-dim its cos slice assignment shape-mismatches).
    assert emb_dim % 4 == 0, "emb_dim must be a multiple of 4"
    half = emb_dim // 2
    side = int(round(math.sqrt(n_patches)))
    assert side * side == n_patches, "n_patches must be a perfect square"
    idx = jnp.arange(n_patches)
    # TODO(synk): get_xpos/get_ypos were not provided in the source snippet;
    # assume a row-major patch grid with x = column index, y = row index.
    x_pos = (idx % side).astype(jnp.float32).reshape(-1, 1)
    y_pos = (idx // side).astype(jnp.float32).reshape(-1, 1)

    def gen(pos):
        denom = jnp.power(10000.0,
                          jnp.arange(0, half, 2).astype(jnp.float32) / half)
        ang = pos / denom                                   # (N, half//2)
        emb = jnp.zeros((pos.shape[0], half), jnp.float32)
        emb = emb.at[:, 0::2].set(jnp.sin(ang))
        emb = emb.at[:, 1::2].set(jnp.cos(ang))
        return emb

    return jnp.concatenate([gen(x_pos), gen(y_pos)], axis=-1)  # (N, emb_dim)


# ------------------------------------------------------------------
# Pallas kernel: row-tiled patch projection + (bias/CLS-folded) pos embedding
# ------------------------------------------------------------------
def _patch_embed_kernel(p_ref, w_ref, pos_ref, o_ref):
    # p_ref:   (TM, Kp)  bf16 patch rows (row 0 of every batch slab is zeros)
    # w_ref:   (Kp, Ep)  bf16 projection weight (zero-padded K rows / E cols)
    # pos_ref: (TM, Ep)  bf16 CLS (row 0 per batch) / pos + conv-bias rows
    # o_ref:   (TM, Ep)  f32 or bf16 output rows
    acc = jnp.dot(p_ref[...], w_ref[...], preferred_element_type=jnp.float32)
    o_ref[...] = (acc + pos_ref[...].astype(jnp.float32)).astype(o_ref.dtype)


# ------------------------------------------------------------------
# Tiling / VMEM heuristics
# ------------------------------------------------------------------
def _default_row_tile():
    """~1024 rows per grid step on v6e/v7x (step-overhead amortization), 512 on v5e."""
    try:
        kind = jax.devices()[0].device_kind.lower()
        if "v5 lite" in kind or "v5lite" in kind or "v5e" in kind:
            return 512
    except Exception:
        pass
    return 1024


_VMEM_BUDGET = 44 * 1024 * 1024   # keep the working set well under v7x's 64 MiB


def _vmem_estimate(tm, kp, ep, out_bytes):
    return (2 * tm * kp * 2          # patches: bf16, double-buffered
            + 1 * kp * ep * 2        # weight : bf16, Buffered(1)
            + 1 * tm * ep * 2        # pos    : bf16, Buffered(1)
            + 2 * tm * ep * out_bytes)   # output: double-buffered


def _choose_tiling(sp, batch, kp, ep, out_bytes, target):
    """Returns (TM, TB, nrep, Sp_padded).

    TM   = rows per MXU pass (multiple of 8),
    TB   = whole batches packed per tile (when per-batch rows are small),
    nrep = row tiles per batch (when per-batch rows exceed the target),
    Sp_padded = per-batch row count after padding (multiple of TM when nrep>1).
    """
    if sp <= target:
        tb = max(1, min(batch, target // sp))
        if batch >= 4:
            tb = min(tb, max(1, batch // 4))   # keep >= ~4 grid steps (v7x megacore)
        while tb > 1 and _vmem_estimate(tb * sp, kp, ep, out_bytes) > _VMEM_BUDGET:
            tb = max(1, tb // 2)
        return tb * sp, tb, 1, sp
    tm = target
    while tm > 256 and _vmem_estimate(tm, kp, ep, out_bytes) > _VMEM_BUDGET:
        tm //= 2
    nrep = -(-sp // tm)
    return tm, 1, nrep, nrep * tm


def _block_spec(shape, index_map, single_buffer=False):
    if single_buffer:
        try:
            return pl.BlockSpec(shape, index_map, pipeline_mode=pl.Buffered(1))
        except (TypeError, AttributeError):   # older jax without pipeline_mode
            pass
    return pl.BlockSpec(shape, index_map)


# ------------------------------------------------------------------
# Forward
# ------------------------------------------------------------------
def patch_embedding_forward(x, conv_w, conv_b, cls_token, pos_emb, patch_size,
                            row_tile=None, out_dtype=jnp.float32):
    """x: (B, C, H, W) NCHW float32 -> (B, N+1, E) out_dtype."""
    B, C, H, W = x.shape
    E = conv_w.shape[0]
    p = patch_size
    Hp, Wp = H // p, W // p
    N = Hp * Wp
    K = C * p * p

    if row_tile is None:
        row_tile = _default_row_tile()

    Kp = _round_up(K, 128)           # lane-aligned contraction dim
    Ep = _round_up(E, 128)           # lane-dense output stores
    Sp0 = _round_up(N + 1, 8)        # per-batch rows (row 0 = CLS slot)
    out_bytes = jnp.dtype(out_dtype).itemsize
    TM, TB, nrep, Sp = _choose_tiling(Sp0, B, Kp, Ep, out_bytes, row_tile)
    Bp = _round_up(B, TB)
    n_bgroups = Bp // TB

    # --- glue: bf16 im2col, (c, kh, kw) flattening so patches @ W == strided conv ---
    # TODO(synk): this transpose is still a separate XLA pass over x; fusing it
    # into the kernel (one patch-row per block) would cut input HBM traffic more.
    patches = x.astype(jnp.bfloat16).reshape(B, C, Hp, p, Wp, p)
    patches = patches.transpose(0, 2, 4, 1, 3, 5).reshape(B, N, K)
    # Front-pad one zero row per batch (becomes the CLS output row), pad per-batch
    # rows to Sp, K to Kp, batches to Bp; then flatten rows for row-tiled matmul.
    patches = jnp.pad(patches, ((0, Bp - B), (1, Sp - 1 - N), (0, Kp - K)))
    patches = patches.reshape(Bp * Sp, Kp)                              # (R, Kp) bf16

    # Conv2d weight (E, C, p, p) -> (Kp, Ep) bf16 with zero padding.
    w_mat = conv_w.reshape(E, K).T.astype(jnp.bfloat16)
    w_mat = jnp.pad(w_mat, ((0, Kp - K), (0, Ep - E)))                  # (Kp, Ep)

    # Fold conv bias into the pos embedding and the CLS token into row 0 (the
    # matching patch row is all zeros, so that output row is exactly CLS).
    pos_pb = pos_emb.astype(jnp.float32) + conv_b.astype(jnp.float32)[None, :]
    pos_full = jnp.concatenate(
        [cls_token.reshape(1, E).astype(jnp.float32), pos_pb], axis=0)  # (N+1, E)
    pos_full = jnp.pad(pos_full, ((0, Sp - (N + 1)), (0, Ep - E)))
    pos_full = pos_full.astype(jnp.bfloat16)                            # (Sp, Ep)

    if nrep == 1:
        # TB whole batches per tile: pre-tile pos on the host (tiny), constant block.
        pos_arr = jnp.tile(pos_full, (TB, 1))                           # (TM, Ep)
        pos_map = lambda t, b: (0, 0)
    else:
        # TM divides Sp: pos block depends only on the (outer) t axis -> fetched
        # once per outer step, never re-fetched per batch group.
        pos_arr = pos_full                                              # (Sp, Ep)
        pos_map = lambda t, b: (t, 0)

    row_map = lambda t, b: (b * nrep + t, 0)

    vmem_bytes = int(min(_vmem_estimate(TM, Kp, Ep, out_bytes) + (8 << 20), 56 << 20))

    out = pl.pallas_call(
        _patch_embed_kernel,
        out_shape=jax.ShapeDtypeStruct((Bp * Sp, Ep), out_dtype),
        grid_spec=pltpu.PrefetchScalarGridSpec(
            num_scalar_prefetch=0,
            grid=(nrep, n_bgroups),
            in_specs=[
                _block_spec((TM, Kp), row_map),
                _block_spec((Kp, Ep), lambda t, b: (0, 0), single_buffer=True),
                _block_spec((TM, Ep), pos_map, single_buffer=True),
            ],
            out_specs=pl.BlockSpec((TM, Ep), row_map),
        ),
        compiler_params=pltpu.CompilerParams(
            dimension_semantics=("parallel", "parallel"),
            vmem_limit_bytes=vmem_bytes),
    )(patches, w_mat, pos_arr)

    out = out.reshape(Bp, Sp, Ep)
    # The CLS row was written by the kernel (row 0 of each batch slab), so the
    # only epilogue left is slicing off the alignment padding.
    return out[:B, :N + 1, :E]                                          # (B, N+1, E)


# ------------------------------------------------------------------
# Pure-JAX f32 reference for sanity checking
# ------------------------------------------------------------------
def _reference_forward(x, conv_w, conv_b, cls_token, pos_emb, patch_size):
    B = x.shape[0]
    E = conv_w.shape[0]
    y = jax.lax.conv_general_dilated(
        x, conv_w,
        window_strides=(patch_size, patch_size),
        padding="VALID",
        dimension_numbers=("NCHW", "OIHW", "NCHW"))
    y = y + conv_b.reshape(1, E, 1, 1)
    y = y.reshape(B, E, -1).transpose(0, 2, 1)              # (B, N, E)
    y = y + pos_emb[None]
    cls = jnp.broadcast_to(cls_token.reshape(1, 1, E), (B, 1, E))
    return jnp.concatenate([cls, y], axis=1)


if __name__ == "__main__":
    # Small, module-consistent shapes.
    img_size = 16
    patch_size = 4
    input_channel = 4
    emb_dim = 32
    batch = 2

    patch_length = img_size // patch_size
    seq_length = patch_length ** 2                           # 16 patches

    key = jax.random.PRNGKey(0)
    k_x, k_w, k_cls = jax.random.split(key, 3)

    # Deterministic parameter init (mirrors trunc_normal_(std=0.02)); a small
    # non-zero bias is used so the bias-folding path is actually exercised.
    conv_w = 0.02 * jax.random.truncated_normal(
        k_w, -2.0, 2.0, (emb_dim, input_channel, patch_size, patch_size),
        dtype=jnp.float32)
    conv_b = 0.05 * jnp.sin(jnp.arange(emb_dim, dtype=jnp.float32))
    cls_token = 0.02 * jax.random.truncated_normal(
        k_cls, -2.0, 2.0, (1, 1, emb_dim), dtype=jnp.float32)
    pos_emb = sinusoidal_pos_emb_2d(seq_length, emb_dim)     # (N, E)

    x = jax.random.normal(
        k_x, (batch, input_channel, img_size, img_size), dtype=jnp.float32)

    ref = _reference_forward(x, conv_w, conv_b, cls_token, pos_emb, patch_size)

    # f32 output (matches the PyTorch module's dtype).
    fwd = jax.jit(functools.partial(patch_embedding_forward, patch_size=patch_size))
    out = jax.block_until_ready(fwd(x, conv_w, conv_b, cls_token, pos_emb))
    assert out.shape == (batch, seq_length + 1, emb_dim), out.shape
    max_err = float(jnp.max(jnp.abs(out - ref)))
    assert max_err < 2e-2, f"f32-out mismatch, max|d|={max_err}"

    # bf16 output path (use when the downstream transformer runs in bf16: halves
    # the dominant output HBM stream of this memory-bound op).
    fwd_bf16 = jax.jit(functools.partial(
        patch_embedding_forward, patch_size=patch_size, out_dtype=jnp.bfloat16))
    out_bf16 = jax.block_until_ready(fwd_bf16(x, conv_w, conv_b, cls_token, pos_emb))
    max_err_bf16 = float(jnp.max(jnp.abs(out_bf16.astype(jnp.float32) - ref)))
    assert max_err_bf16 < 5e-2, f"bf16-out mismatch, max|d|={max_err_bf16}"

    print("KERNEL_OK")
</pallas_src>

<mosaic_0001>
module attributes {stable_mosaic.version = 11 : i64} {
  func.func @_patch_embed_kernel(%arg0: i32, %arg1: i32, %arg2: memref<48x128xbf16, #tpu.memory_space<vmem>>, %arg3: memref<128x128xbf16, #tpu.memory_space<vmem>>, %arg4: memref<48x128xbf16, #tpu.memory_space<vmem>>, %arg5: memref<48x128xf32, #tpu.memory_space<vmem>>) attributes {dimension_semantics = [#tpu.dimension_semantics<parallel>, #tpu.dimension_semantics<parallel>], iteration_bounds = array<i64: 1, 1>, scalar_prefetch = 0 : i64, scratch_operands = 0 : i64, tpu.core_type = #tpu.core_type<tc>, window_params = [{transform_indices = @transform_0, window_bounds = array<i64: 48, 128>}, {pipeline_mode = #tpu.pipeline_mode<synchronous>, transform_indices = @transform_1, window_bounds = array<i64: 128, 128>}, {pipeline_mode = #tpu.pipeline_mode<synchronous>, transform_indices = @transform_2, window_bounds = array<i64: 48, 128>}, {transform_indices = @transform_3, window_bounds = array<i64: 48, 128>}]} {
    %c0 = arith.constant 0 : index
    %c0_0 = arith.constant 0 : index
    %0 = vector.load %arg2[%c0, %c0_0] : memref<48x128xbf16, #tpu.memory_space<vmem>>, vector<48x128xbf16>
    %c0_1 = arith.constant 0 : index
    %c0_2 = arith.constant 0 : index
    %1 = vector.load %arg3[%c0_1, %c0_2] : memref<128x128xbf16, #tpu.memory_space<vmem>>, vector<128x128xbf16>
    %cst = arith.constant dense<0.000000e+00> : vector<48x128xf32>
    %2 = tpu.matmul %0, %1, %cst {dimension_numbers = #tpu.dot_dimension_numbers<[1], [0], [0], [1], [0, 0, 1, 1], [], []>} : vector<48x128xbf16>, vector<128x128xbf16>, vector<48x128xf32> -> vector<48x128xf32>
    %c0_3 = arith.constant 0 : index
    %c0_4 = arith.constant 0 : index
    %3 = vector.load %arg4[%c0_3, %c0_4] : memref<48x128xbf16, #tpu.memory_space<vmem>>, vector<48x128xbf16>
    %4 = arith.extf %3 : vector<48x128xbf16> to vector<48x128xf32>
    %5 = arith.addf %2, %4 : vector<48x128xf32>
    %c0_5 = arith.constant 0 : index
    %c0_6 = arith.constant 0 : index
    %6 = vector.load %arg5[%c0_5, %c0_6] : memref<48x128xf32, #tpu.memory_space<vmem>>, vector<48x128xf32>
    tpu.vector_store %arg5[%c0_5, %c0_6], %5 {strides = array<i32>} : memref<48x128xf32, #tpu.memory_space<vmem>>, vector<48x128xf32>,
    return
  }
  func.func @transform_0(%arg0: i32, %arg1: i32) -> (i32, i32) {
    %c1_i32 = arith.constant 1 : i32
    %0 = arith.muli %arg1, %c1_i32 : i32
    %1 = arith.addi %0, %arg0 : i32
    %c0_i32 = arith.constant 0 : i32
    %c0_i32_0 = arith.constant 0 : i32
    return %1, %c0_i32 : i32, i32
  }
  func.func @transform_1(%arg0: i32, %arg1: i32) -> (i32, i32) {
    %c0_i32 = arith.constant 0 : i32
    %c0_i32_0 = arith.constant 0 : i32
    %c0_i32_1 = arith.constant 0 : i32
    return %c0_i32, %c0_i32_0 : i32, i32
  }
  func.func @transform_2(%arg0: i32, %arg1: i32) -> (i32, i32) {
    %c0_i32 = arith.constant 0 : i32
    %c0_i32_0 = arith.constant 0 : i32
    %c0_i32_1 = arith.constant 0 : i32
    return %c0_i32, %c0_i32_0 : i32, i32
  }
  func.func @transform_3(%arg0: i32, %arg1: i32) -> (i32, i32) {
    %c1_i32 = arith.constant 1 : i32
    %0 = arith.muli %arg1, %c1_i32 : i32
    %1 = arith.addi %0, %arg0 : i32
    %c0_i32 = arith.constant 0 : i32
    %c0_i32_0 = arith.constant 0 : i32
    return %1, %c0_i32 : i32, i32
  }
}

</mosaic_0001>

<bundles_post_ra>
// kernel: patch_embedding_forward.1
= control target key start
LH: loop header
LB: loop body
LE: loop exit
PB: predicated region body
PF: predicated region fallthrough
CT: control target
= control target key end

     0   :  { %s377_s1 = inlined_call_operand.vmem [shape: bf16[128,128], index: 1, kind: input, shape index: {}]   ;;  %s378_s0 = inlined_call_operand.vmem [shape: bf16[48,128], index: 0, kind: input, shape index: {}]   ;;  %s379_s2 = inlined_call_operand.vmem [shape: bf16[48,128], index: 2, kind: input, shape index: {}]   ;;  %s380_s3 = inlined_call_operand.vmem [shape: f32[48,128], index: 3, kind: output, shape index: {}]  }
   0x1   :  { %v266_v0 = vld [vmem:[%s377_s1 + $0x38] sm:$0xff]  ;;  %v265_v1 = vld [vmem:[%s377_s1 + $0x30] sm:$0xff]  ;;  %v264_v2 = vld [vmem:[%s377_s1 + $0x28] sm:$0xff] }
   0x2   :  { %150 = vmatpush.bf16.msra.mxu0 %v266_v0  ;;  %281 = vmatpush.bf16.msra.mxu1 %v266_v0  ;;  %v263_v3 = vld [vmem:[%s377_s1 + $0x20] sm:$0xff]  ;;  %v262_v4 = vld [vmem:[%s377_s1 + $0x18] sm:$0xff]  ;;  %v261_v5 = vld [vmem:[%s377_s1 + $0x10] sm:$0xff] }
   0x3   :  { %282 = vmatpush.bf16.msra.mxu2 %v266_v0  ;;  %v260_v6 = vld [vmem:[%s377_s1 + $0x8] sm:$0xff]  ;;  %v259_v7 = vld [vmem:[%s377_s1] sm:$0xff]  ;;  %v258_v10 = vld [vmem:[%s378_s0 + $0x10] sm:$0xff] }
   0x4   :  { %v256_v8 = vld [vmem:[%s378_s0] sm:$0xff]  ;;  %v257_v9 = vld [vmem:[%s378_s0 + $0x8] sm:$0xff]  ;;  %v280_v19 = vld [vmem:[%s379_s2 + $0x10] sm:$0xff]  }
   0x5   :  { %v268_v11 = vld [vmem:[%s379_s2] sm:$0xff]   ;;  %v279_v12 = vld [vmem:[%s379_s2 + $0x8] sm:$0xff]   ;;  %v277_v20 = vunpack.c.l.bf16 %v280_v19  ;;  %v278_v29 = vunpack.c.h.bf16 %v280_v19 }
   0x6   :  { %151 = vmatpush.bf16.msra.mxu0 %v265_v1  ;;  %283 = vmatpush.bf16.msra.mxu1 %v265_v1  ;;  %v269_v13 = vunpack.c.l.bf16 %v268_v11  ;;  %v273_v14 = vunpack.c.l.bf16 %v279_v12  ;;  %v270_v21 = vunpack.c.h.bf16 %v268_v11  ;;  %v274_v22 = vunpack.c.h.bf16 %v279_v12 }
   0x7   :  { %284 = vmatpush.bf16.msra.mxu2 %v265_v1 }
   0xa   :  { %152 = vmatpush.bf16.msra.mxu0 %v264_v2  ;;  %285 = vmatpush.bf16.msra.mxu1 %v264_v2 }
   0xb   :  { %286 = vmatpush.bf16.msra.mxu2 %v264_v2 }
   0xe   :  { %153 = vmatpush.bf16.msra.mxu0 %v263_v3  ;;  %287 = vmatpush.bf16.msra.mxu1 %v263_v3 }
   0xf   :  { %288 = vmatpush.bf16.msra.mxu2 %v263_v3 }
  0x12   :  { %154 = vmatpush.bf16.msra.mxu0 %v262_v4  ;;  %289 = vmatpush.bf16.msra.mxu1 %v262_v4 }
  0x13   :  { %290 = vmatpush.bf16.msra.mxu2 %v262_v4 }
  0x16   :  { %155 = vmatpush.bf16.msra.mxu0 %v261_v5  ;;  %291 = vmatpush.bf16.msra.mxu1 %v261_v5 }
  0x17   :  { %292 = vmatpush.bf16.msra.mxu2 %v261_v5 }
  0x1a   :  { %156 = vmatpush.bf16.msra.mxu0 %v260_v6  ;;  %293 = vmatpush.bf16.msra.mxu1 %v260_v6 }
  0x1b   :  { %294 = vmatpush.bf16.msra.mxu2 %v260_v6 }
  0x1e   :  { %157 = vmatpush.bf16.msra.mxu0 %v259_v7  ;;  %295 = vmatpush.bf16.msra.mxu1 %v259_v7 }
  0x1f   :  { %296 = vmatpush.bf16.msra.mxu2 %v259_v7 }
  0x21   :  { %158 = vmatmul.bf16.vlgmr.msra.gmra.mxu0 %v256_v8  ;;  %163 = vmatmul.bf16.vlgmr.msra.gmra.mxu1 %v257_v9 }
  0x22   :  { %168 = vmatmul.bf16.vlgmr.msra.gmra.mxu2 %v258_v10 }
  0x9e   :  { %v159_v15 = vpop.f32.mrf.mxu0  ;;  %v164_v16 = vpop.f32.mrf.mxu1 }
  0x9f   :  { %v160_v17 = vadd.f32 %v269_v13, %v159_v15  ;;  %v165_v18 = vadd.f32 %v273_v14, %v164_v16 }
  0xa1   :  { %174 = vst [vmem:[%s380_s3] sm:$0xff] %v160_v17 }
  0xa2   :  { %176 = vst [vmem:[%s380_s3 + $0x10] sm:$0xff] %v165_v18 }
  0xa5   :  { %v169_v23 = vpop.f32.mrf.mxu2 }
  0xa6   :  { %v170_v24 = vadd.f32 %v277_v20, %v169_v23  ;;  %v161_v25 = vpop.f32.mrf.mxu0  ;;  %v166_v26 = vpop.f32.mrf.mxu1 }
  0xa7   :  { %v162_v27 = vadd.f32 %v270_v21, %v161_v25  ;;  %v167_v28 = vadd.f32 %v274_v22, %v166_v26 }
  0xa8   :  { %178 = vst [vmem:[%s380_s3 + $0x20] sm:$0xff] %v170_v24 }
  0xa9   :  { %175 = vst [vmem:[%s380_s3 + $0x8] sm:$0xff] %v162_v27 }
  0xaa   :  { %177 = vst [vmem:[%s380_s3 + $0x18] sm:$0xff] %v167_v28 }
  0xad   :  { %v171_v30 = vpop.f32.mrf.mxu2 }
  0xae   :  { %v172_v31 = vadd.f32 %v278_v29, %v171_v30 }
  0xb0   :  { %179 = vst [vmem:[%s380_s3 + $0x28] sm:$0xff] %v172_v31 }

</bundles_post_ra>
